<compile_context>
chip_gen: v5e
topology: v5e:2x2
jax: 0.10.0
libtpu: 0.0.40
codegen_flags: <defaults>
</compile_context>

<pallas_src>
import numpy as np
import jax
import jax.numpy as jnp
from jax.experimental import pallas as pl
from jax.experimental.pallas import tpu as pltpu

# Deterministic "INIT" for the linear weight (PyTorch: torch.tensor([INIT]) -> shape (1, 2)).
INIT = [0.5, -1.5]

LANE = 128                 # TPU lane width (last block dim)
PAIRS_PER_ROW = LANE // 2  # 64 samples per 128-lane row of the flat view


def _linear_kernel(x_ref, w_ref, o_ref):
    # x_ref: (R, 128) f32 -- 64 interleaved (x0, x1) sample pairs per row (natural x layout)
    # w_ref: (128, 64) f32 -- kron(I_64, [[w0],[w1]]): column k picks pair k and applies weights
    # o_ref: (R, 64)  f32 -- one y value per sample pair
    # One MXU matmul per tile performs deinterleave + weighting + pairwise sum; MXU work
    # (~256 flop/sample) is fully hidden under the HBM DMA of this memory-bound kernel.
    o_ref[...] = jnp.dot(x_ref[...], w_ref[...], preferred_element_type=jnp.float32)


def linear_pallas(x, weight, *, block_rows=8192):
    """Kernel path: x (N, 2) f32, weight (1, 2) f32 -> (N,) f32."""
    n, f = x.shape
    assert f == 2, "LinearModel expects in_features == 2"
    w = weight.astype(jnp.float32).reshape(2)

    # Constant (128, 64) deinterleave-and-weight matrix: dw[2k, k] = w0, dw[2k+1, k] = w1.
    dw = jnp.kron(jnp.eye(PAIRS_PER_ROW, dtype=jnp.float32), w[:, None])

    # Transpose-free, lane-dense view of x: row-major (N, 2) -> (2N,) -> (m, 128).
    # Both reshapes are layout-preserving bitcasts (no extra HBM pass).
    flat = x.astype(jnp.float32).reshape(-1)
    m = pl.cdiv(flat.shape[0], LANE)
    tail = m * LANE - flat.shape[0]
    if tail:
        # Only triggers when N % 64 != 0.
        # TODO(synk): for huge misaligned N, handle the <64-sample tail with plain jnp
        #             instead of this full-array pad (the pad is an extra HBM pass).
        flat = jnp.pad(flat, (0, tail))
    xm = flat.reshape(m, LANE)

    # Row tile: multiple of 8 sublanes, or the whole (possibly small) array.
    block_rows = max(8, (block_rows // 8) * 8)
    r = m if m <= block_rows else block_rows
    num_blocks = pl.cdiv(m, r)  # ragged last block (if any) is clipped by Pallas

    out = pl.pallas_call(
        _linear_kernel,
        out_shape=jax.ShapeDtypeStruct((m, PAIRS_PER_ROW), jnp.float32),
        grid=(num_blocks,),
        in_specs=[
            pl.BlockSpec((r, LANE), lambda i: (i, 0)),               # x tiles, lane/sublane dense
            pl.BlockSpec((LANE, PAIRS_PER_ROW), lambda i: (0, 0)),   # weight matrix, resident
        ],
        out_specs=pl.BlockSpec((r, PAIRS_PER_ROW), lambda i: (i, 0)),
        compiler_params=pltpu.CompilerParams(
            dimension_semantics=("parallel",),  # shard row-grid across v7x's 2 TCs
        ),
        cost_estimate=pl.CostEstimate(
            flops=2 * m * LANE * PAIRS_PER_ROW,
            transcendentals=0,
            bytes_accessed=4 * (xm.size + m * PAIRS_PER_ROW + dw.size),
        ),
    )(xm, dw)

    # Undo the flat view (= .squeeze(1) of the torch forward) and drop alignment padding.
    return out.reshape(-1)[:n]


def linear_model_forward(x, weight, *, block_rows=8192, min_kernel_batch=65536):
    """LinearModel.forward: x (N, 2) f32 -> (N,) f32."""
    n = x.shape[0]
    if n < min_kernel_batch:
        # Small-N fallback: a fused elementwise op is cheaper than kernel launch + glue.
        w = weight.astype(jnp.float32).reshape(2)
        return x[:, 0] * w[0] + x[:, 1] * w[1]
    return linear_pallas(x, weight, block_rows=block_rows)


if __name__ == "__main__":
    key = jax.random.PRNGKey(0)
    weight = jnp.asarray([INIT], dtype=jnp.float32)  # (1, 2), nn.Linear convention
    w_np = np.asarray(weight, dtype=np.float64)[0]

    def reference(x):
        xf = np.asarray(x, dtype=np.float64)
        return xf[:, 0] * w_np[0] + xf[:, 1] * w_np[1]

    # (batch, block_rows, force_kernel_path)
    checks = [
        (8,    8192, False),  # tiny batch -> fused-jnp fallback path
        (512,  8192, True),   # single-tile kernel path, N % 64 == 0 (no pad), block (8, 128)
        (1000, 8,    True),   # multi-tile kernel path + tail-pad path (grid = 2)
        (4096, 16,   True),   # multi-tile kernel path, no pad (grid = 4)
    ]
    keys = jax.random.split(key, len(checks))
    for k, (batch, br, force) in zip(keys, checks):
        x = jax.random.normal(k, (batch, 2), dtype=jnp.float32)
        y = linear_model_forward(
            x, weight, block_rows=br, min_kernel_batch=0 if force else 65536
        )
        y = jax.block_until_ready(y)
        assert y.shape == (batch,)
        # Tolerance is loose enough to cover a worst-case reduced-precision MXU pass;
        # with the native f32 matmul path the observed error is ~1e-6.
        np.testing.assert_allclose(np.asarray(y), reference(x), rtol=2e-2, atol=2e-2)

    print("KERNEL_OK")
</pallas_src>

<mosaic_0001>
module attributes {stable_mosaic.version = 11 : i64} {
  func.func @_linear_kernel(%arg0: i32, %arg1: memref<8x128xf32, #tpu.memory_space<vmem>>, %arg2: memref<128x64xf32, #tpu.memory_space<vmem>>, %arg3: memref<8x64xf32, #tpu.memory_space<vmem>>) attributes {dimension_semantics = [#tpu.dimension_semantics<parallel>], iteration_bounds = array<i64: 1>, scalar_prefetch = 0 : i64, scratch_operands = 0 : i64, tpu.core_type = #tpu.core_type<tc>, window_params = [{transform_indices = @transform_0, window_bounds = array<i64: 8, 128>}, {pipeline_mode = #tpu.pipeline_mode<synchronous>, transform_indices = @transform_1, window_bounds = array<i64: 128, 64>}, {transform_indices = @transform_2, window_bounds = array<i64: 8, 64>}]} {
    %c0 = arith.constant 0 : index
    %c0_0 = arith.constant 0 : index
    %0 = vector.load %arg1[%c0, %c0_0] : memref<8x128xf32, #tpu.memory_space<vmem>>, vector<8x128xf32>
    %c0_1 = arith.constant 0 : index
    %c0_2 = arith.constant 0 : index
    %1 = vector.load %arg2[%c0_1, %c0_2] : memref<128x64xf32, #tpu.memory_space<vmem>>, vector<128x64xf32>
    %cst = arith.constant dense<0.000000e+00> : vector<8x64xf32>
    %2 = tpu.matmul %0, %1, %cst {dimension_numbers = #tpu.dot_dimension_numbers<[1], [0], [0], [1], [0, 0, 1, 1], [], []>} : vector<8x128xf32>, vector<128x64xf32>, vector<8x64xf32> -> vector<8x64xf32>
    %c0_3 = arith.constant 0 : index
    %c0_4 = arith.constant 0 : index
    %3 = vector.load %arg3[%c0_3, %c0_4] : memref<8x64xf32, #tpu.memory_space<vmem>>, vector<8x64xf32>
    tpu.vector_store %arg3[%c0_3, %c0_4], %2 {strides = array<i32>} : memref<8x64xf32, #tpu.memory_space<vmem>>, vector<8x64xf32>,
    return
  }
  func.func @transform_0(%arg0: i32) -> (i32, i32) {
    %c0_i32 = arith.constant 0 : i32
    %c0_i32_0 = arith.constant 0 : i32
    return %arg0, %c0_i32 : i32, i32
  }
  func.func @transform_1(%arg0: i32) -> (i32, i32) {
    %c0_i32 = arith.constant 0 : i32
    %c0_i32_0 = arith.constant 0 : i32
    %c0_i32_1 = arith.constant 0 : i32
    return %c0_i32, %c0_i32_0 : i32, i32
  }
  func.func @transform_2(%arg0: i32) -> (i32, i32) {
    %c0_i32 = arith.constant 0 : i32
    %c0_i32_0 = arith.constant 0 : i32
    return %arg0, %c0_i32 : i32, i32
  }
}

</mosaic_0001>

<bundles_post_ra>
// kernel: tpu_custom_call.1
= control target key start
LH: loop header
LB: loop body
LE: loop exit
PB: predicated region body
PF: predicated region fallthrough
CT: control target
= control target key end

     0   :  { %s164_s0 = inlined_call_operand.vmem [shape: f32[8,128], index: 0, kind: input, shape index: {}]   ;;  %s165_s1 = inlined_call_operand.vmem [shape: f32[128,64], index: 1, kind: input, shape index: {}]   ;;  %s166_s2 = inlined_call_operand.hbm [shape: f32[8,64], index: 2, kind: output, shape index: {}]  }
   0x1   :  { %v28_v0 = vld [vmem:[%s165_s1 + $0x78] sm:$0xff]  ;;  %v27_v1 = vld [vmem:[%s165_s1 + $0x70] sm:$0xff]  ;;  %v26_v2 = vld [vmem:[%s165_s1 + $0x68] sm:$0xff] }
   0x2   :  { %29 = vmatpush.msra.mxu0 %v28_v0  ;;  %v25_v3 = vld [vmem:[%s165_s1 + $0x60] sm:$0xff] }
   0x4   :  { %30 = vmatpush.msra.mxu0 %v27_v1 }
   0x6   :  { %31 = vmatpush.msra.mxu0 %v26_v2 }
   0x7   :  { %7 = vsyncpa [#allocation3], 0  ;;  %v24_v4 = vld [vmem:[%s165_s1 + $0x58] sm:$0xff]  ;;  %v23_v5 = vld [vmem:[%s165_s1 + $0x50] sm:$0xff]  ;;  %s94_s15 = smov [#allocation2]   ;;  %s58_s19 = sshll.u32 %s166_s2, 4  ;;  %s59_s19 = int_to_ptr.hbm [resolvable:$true] %s58_s19 }
   0x8   :  { %32 = vmatpush.msra.mxu0 %v25_v3  ;;  %v22_v6 = vld [vmem:[%s165_s1 + $0x48] sm:$0xff]  ;;  %v21_v7 = vld [vmem:[%s165_s1 + $0x40] sm:$0xff]  ;;  %v20_v8 = vld [vmem:[%s165_s1 + $0x38] sm:$0xff]  ;;  %s56_s16 = sshll.u32 %s94_s15, 4  ;;  %vm49_vm0 = vcmask 523264   ;;  %s57_s16 = int_to_ptr.vmem [resolvable:$true] %s56_s16 }
   0x9   :  { %v19_v9 = vld [vmem:[%s165_s1 + $0x30] sm:$0xff]  ;;  %v18_v10 = vld [vmem:[%s165_s1 + $0x28] sm:$0xff]  ;;  %v17_v11 = vld [vmem:[%s165_s1 + $0x20] sm:$0xff] }
   0xa   :  { %33 = vmatpush.msra.mxu0 %v24_v4  ;;  %v16_v12 = vld [vmem:[%s165_s1 + $0x18] sm:$0xff]  ;;  %v15_v13 = vld [vmem:[%s165_s1 + $0x10] sm:$0xff]  ;;  %v14_v14 = vld [vmem:[%s165_s1 + $0x8] sm:$0xff] }
   0xb   :  { %v13_v15 = vld [vmem:[%s165_s1] sm:$0xff] }
   0xc   :  { %34 = vmatpush.msra.mxu0 %v23_v5  ;;  %v12_v16 = vld [vmem:[%s164_s0] sm:$0xff] }
   0xe   :  { %35 = vmatpush.msra.mxu0 %v22_v6 }
  0x10   :  { %36 = vmatpush.msra.mxu0 %v21_v7 }
  0x12   :  { %37 = vmatpush.msra.mxu0 %v20_v8 }
  0x14   :  { %38 = vmatpush.msra.mxu0 %v19_v9 }
  0x16   :  { %39 = vmatpush.msra.mxu0 %v18_v10 }
  0x18   :  { %40 = vmatpush.msra.mxu0 %v17_v11 }
  0x1a   :  { %41 = vmatpush.msra.mxu0 %v16_v12 }
  0x1c   :  { %42 = vmatpush.msra.mxu0 %v15_v13 }
  0x1e   :  { %43 = vmatpush.msra.mxu0 %v14_v14 }
  0x20   :  { %44 = vmatpush.msra.mxu0 %v13_v15 }
  0x21   :  { %45 = vmatmul.f32.vlgmr.msra.gmra.mxu0 %v12_v16 }
  0x9e   :  { %v46_v17 = vpop.f32.mrf.mxu0 }
  0x9f   :  { %50 = vst.msk [vmem:[#allocation2] sm:$0xff] %vm49_vm0, %v46_v17 }
  0xa0   :  { %61 = dma.vmem_to_hbm [thread:$0]  %s57_s16, 128, %s59_s19, [#allocation3]  }
  0xa1   :  { %92 = dma.done.wait [#allocation3], 128  }
  0xa2   :  { %93 = vsyncadd [#allocation3], 4294967168 }
  0xa3   :  { %66 = vsyncpa [#allocation3], 1 }

</bundles_post_ra>
